<compile_context>
chip_gen: v6e
topology: v6e:2x2x1
jax: 0.10.0
libtpu: 0.0.40
codegen_flags: <defaults>
</compile_context>

<pallas_src>
import jax
import jax.numpy as jnp
from jax.experimental import pallas as pl
from jax.experimental.pallas import tpu as pltpu


def _activation(kind):
    if kind == 'tanh':
        return jnp.tanh
    if kind == 'ReLU':
        return lambda x: jnp.maximum(x, 0.0)
    if kind == 'LReLU':
        return lambda x: jnp.where(x >= 0, x, 0.01 * x)
    if kind == 'swish':
        return lambda x: x * jax.nn.sigmoid(x)
    raise ValueError(kind)


def _round_up(n, m):
    return ((n + m - 1) // m) * m


def _make_kernel(n_layers, act_fn, inv_inch, rms_eps=1e-7):
    """Fused kernel: (repeat+grouped conv) matmul -> RMS norm -> folded MLP."""

    def kernel(x_ref, d_ref, cb_ref, p_ref, pt_ref, *rest):
        out_ref = rest[-1]
        wb = rest[:-1]                       # W_0, b_0, ..., W_{L-1}, b_{L-1}

        x = x_ref[...]                                           # (TB, inch)

        # grouped 1x1 Conv1d (per-channel affine on 8 replicas) as one matmul
        emb = jnp.dot(x, d_ref[...], preferred_element_type=jnp.float32)
        emb = act_fn(emb + cb_ref[...])                          # (TB, E_pad)

        # RMS over the `inch` variables per embedding slot j, via MXU pooling:
        #   ss[b, j] = sum_c emb[b, c*8+j]^2     (P is the 0/1 pooling matrix)
        P = p_ref[...]                                           # (E_pad, 8)
        ss = jnp.dot(emb * emb, P, preferred_element_type=jnp.float32)
        inv = pl.reciprocal(jnp.sqrt(ss * inv_inch) + rms_eps, approx=True)
        # scatter 1/denom back to (TB, E_pad) with P^T on the MXU (zero on pad)
        inv_full = jnp.dot(inv, pt_ref[...], preferred_element_type=jnp.float32)
        h = emb * inv_full

        # MLP classifier: Linear (eval-BN pre-folded) -> act -> Dropout(=id)
        for i in range(n_layers):
            W = wb[2 * i][...]
            b = wb[2 * i + 1][...]
            h = jnp.dot(h, W, preferred_element_type=jnp.float32) + b
            if i < n_layers - 1:
                h = act_fn(h)
        # TODO(synk): Dropout(p=0.5) sampling and BatchNorm batch statistics
        # are training-mode only; this kernel implements the eval forward.
        out_ref[...] = h

    return kernel


def classifier_with_embedding(x, params, act='swish', batch_tile=512,
                              bn_eps=1e-5):
    B, inch = x.shape
    E = inch * 8
    E_pad = _round_up(E, 128)
    nchs = params['nchs']                 # [E] + nchs_orig
    n_layers = len(nchs) - 1
    out_dim = nchs[-1]
    act_fn = _activation(act)

    x = x.astype(jnp.float32)

    # --- fold 8x replication + grouped conv weight into D (inch, E_pad) ---
    conv_w = params['conv_w'].reshape(-1).astype(jnp.float32)        # (E,)
    chan = jnp.arange(E) // 8
    D = jnp.zeros((inch, E_pad), jnp.float32).at[chan, jnp.arange(E)].set(conv_w)
    conv_b = jnp.zeros((1, E_pad), jnp.float32).at[:, :E].set(
        params['conv_b'].reshape(1, E).astype(jnp.float32))

    # --- 0/1 pooling matrices for the RMS over the inch variables ---
    P = jnp.zeros((E_pad, 8), jnp.float32).at[
        jnp.arange(E), jnp.arange(E) % 8].set(1.0)
    PT = P.T                                                        # (8, E_pad)

    # --- fold eval-mode BN into the Linears, zero-pad to 128-lane widths ---
    lin = []
    in_pad = E_pad
    for i in range(n_layers):
        W = params['lin_w'][i].astype(jnp.float32)        # (nchs[i], nchs[i+1])
        b = params['lin_b'][i].reshape(1, -1).astype(jnp.float32)
        if i < n_layers - 1:
            g = params['bn_gamma'][i].reshape(1, -1)
            bt = params['bn_beta'][i].reshape(1, -1)
            mu = params['bn_mean'][i].reshape(1, -1)
            var = params['bn_var'][i].reshape(1, -1)
            scale = g * jax.lax.rsqrt(var + bn_eps)
            W = W * scale
            b = (b - mu) * scale + bt
        out_pad = _round_up(nchs[i + 1], 128)
        W_p = jnp.zeros((in_pad, out_pad), jnp.float32).at[
            :nchs[i], :nchs[i + 1]].set(W)
        b_p = jnp.zeros((1, out_pad), jnp.float32).at[:, :nchs[i + 1]].set(b)
        lin.append((W_p, b_p))
        in_pad = out_pad
    out_pad = in_pad

    # --- batch tiling (pad batch so no rows are dropped) ---
    batch_tile = max(8, _round_up(min(batch_tile, _round_up(B, 8)), 8))
    Bp = _round_up(B, batch_tile)
    if Bp != B:
        x = jnp.pad(x, ((0, Bp - B), (0, 0)))
    grid = (Bp // batch_tile,)

    inputs = [x, D, conv_b, P, PT]
    in_specs = [
        pl.BlockSpec((batch_tile, inch), lambda i: (i, 0)),
        pl.BlockSpec(D.shape, lambda i: (0, 0)),
        pl.BlockSpec(conv_b.shape, lambda i: (0, 0)),
        pl.BlockSpec(P.shape, lambda i: (0, 0)),
        pl.BlockSpec(PT.shape, lambda i: (0, 0)),
    ]
    for W_p, b_p in lin:
        inputs += [W_p, b_p]
        in_specs += [pl.BlockSpec(W_p.shape, lambda i: (0, 0)),
                     pl.BlockSpec(b_p.shape, lambda i: (0, 0))]

    kernel = _make_kernel(n_layers, act_fn, 1.0 / inch)
    out = pl.pallas_call(
        kernel,
        out_shape=jax.ShapeDtypeStruct((Bp, out_pad), jnp.float32),
        grid=grid,
        in_specs=in_specs,
        out_specs=pl.BlockSpec((batch_tile, out_pad), lambda i: (i, 0)),
        compiler_params=pltpu.CompilerParams(
            dimension_semantics=("parallel",)),
    )(*inputs)
    return out[:B, :out_dim]


def reference(x, params, act, bn_eps=1e-5):
    """Pure-JAX reference matching the PyTorch eval-mode forward."""
    act_fn = _activation(act)
    B, inch = x.shape
    emb = act_fn(jnp.repeat(x, 8, axis=1) * params['conv_w'] + params['conv_b'])
    emb3 = emb.reshape(B, inch, 8)
    emb3 = emb3 / (jnp.sqrt(jnp.mean(emb3 ** 2, axis=1, keepdims=True)) + 1e-7)
    h = emb3.reshape(B, -1)
    n_layers = len(params['lin_w'])
    for i in range(n_layers):
        h = h @ params['lin_w'][i] + params['lin_b'][i]
        if i < n_layers - 1:
            h = ((h - params['bn_mean'][i])
                 * jax.lax.rsqrt(params['bn_var'][i] + bn_eps)
                 * params['bn_gamma'][i] + params['bn_beta'][i])
            h = act_fn(h)
    return h


if __name__ == "__main__":
    key = jax.random.PRNGKey(0)
    B, inch = 40, 16                    # x: (batch, inch)
    nchs_orig = [32, 8]
    act = 'swish'
    E = inch * 8                        # embd_ch = inch * 8 = 128
    nchs = [E] + nchs_orig
    n_layers = len(nchs) - 1
    n_hidden = n_layers - 1

    keys = jax.random.split(key, 3 + 2 * n_layers + 4 * max(n_hidden, 1))
    x = jax.random.normal(keys[0], (B, inch), jnp.float32)
    conv_w = 0.5 * jax.random.normal(keys[1], (1, E), jnp.float32)
    conv_b = 0.1 * jax.random.normal(keys[2], (1, E), jnp.float32)

    lin_w, lin_b = [], []
    for i in range(n_layers):
        kw, kb = keys[3 + 2 * i], keys[4 + 2 * i]
        bound = 1.0 / (nchs[i] ** 0.5)
        # stored transposed vs PyTorch: (in_features, out_features)
        lin_w.append(jax.random.uniform(kw, (nchs[i], nchs[i + 1]),
                                        jnp.float32, -bound, bound))
        lin_b.append(jax.random.uniform(kb, (1, nchs[i + 1]),
                                        jnp.float32, -bound, bound))

    bn_gamma, bn_beta, bn_mean, bn_var = [], [], [], []
    off = 3 + 2 * n_layers
    for i in range(n_hidden):
        k1, k2, k3, k4 = keys[off + 4 * i: off + 4 * i + 4]
        n = nchs[i + 1]
        bn_gamma.append(jax.random.uniform(k1, (1, n), jnp.float32, 0.5, 1.5))
        bn_beta.append(0.1 * jax.random.normal(k2, (1, n), jnp.float32))
        bn_mean.append(0.1 * jax.random.normal(k3, (1, n), jnp.float32))
        bn_var.append(jax.random.uniform(k4, (1, n), jnp.float32, 0.5, 1.5))

    params = dict(nchs=nchs, conv_w=conv_w, conv_b=conv_b,
                  lin_w=lin_w, lin_b=lin_b,
                  bn_gamma=bn_gamma, bn_beta=bn_beta,
                  bn_mean=bn_mean, bn_var=bn_var)

    out = classifier_with_embedding(x, params, act=act, batch_tile=16)
    out = jax.block_until_ready(out)

    ref = reference(x, params, act)
    assert out.shape == (B, nchs_orig[-1])
    assert jnp.allclose(out, ref, atol=2e-3, rtol=2e-3), "mismatch vs JAX reference"
    print("KERNEL_OK")
</pallas_src>

<mosaic_0001>
module attributes {stable_mosaic.version = 11 : i64} {
  func.func @kernel(%arg0: i32, %arg1: memref<16x16xf32, #tpu.memory_space<vmem>>, %arg2: memref<16x128xf32, #tpu.memory_space<vmem>>, %arg3: memref<1x128xf32, #tpu.memory_space<vmem>>, %arg4: memref<128x8xf32, #tpu.memory_space<vmem>>, %arg5: memref<8x128xf32, #tpu.memory_space<vmem>>, %arg6: memref<128x128xf32, #tpu.memory_space<vmem>>, %arg7: memref<1x128xf32, #tpu.memory_space<vmem>>, %arg8: memref<128x128xf32, #tpu.memory_space<vmem>>, %arg9: memref<1x128xf32, #tpu.memory_space<vmem>>, %arg10: memref<16x128xf32, #tpu.memory_space<vmem>>) attributes {dimension_semantics = [#tpu.dimension_semantics<parallel>], iteration_bounds = array<i64: 3>, scalar_prefetch = 0 : i64, scratch_operands = 0 : i64, tpu.core_type = #tpu.core_type<tc>, window_params = [{transform_indices = @transform_0, window_bounds = array<i64: 16, 16>}, {pipeline_mode = #tpu.pipeline_mode<synchronous>, transform_indices = @transform_1, window_bounds = array<i64: 16, 128>}, {pipeline_mode = #tpu.pipeline_mode<synchronous>, transform_indices = @transform_2, window_bounds = array<i64: 1, 128>}, {pipeline_mode = #tpu.pipeline_mode<synchronous>, transform_indices = @transform_3, window_bounds = array<i64: 128, 8>}, {pipeline_mode = #tpu.pipeline_mode<synchronous>, transform_indices = @transform_4, window_bounds = array<i64: 8, 128>}, {pipeline_mode = #tpu.pipeline_mode<synchronous>, transform_indices = @transform_5, window_bounds = array<i64: 128, 128>}, {pipeline_mode = #tpu.pipeline_mode<synchronous>, transform_indices = @transform_6, window_bounds = array<i64: 1, 128>}, {pipeline_mode = #tpu.pipeline_mode<synchronous>, transform_indices = @transform_7, window_bounds = array<i64: 128, 128>}, {pipeline_mode = #tpu.pipeline_mode<synchronous>, transform_indices = @transform_8, window_bounds = array<i64: 1, 128>}, {transform_indices = @transform_9, window_bounds = array<i64: 16, 128>}]} {
    %c0 = arith.constant 0 : index
    %c0_0 = arith.constant 0 : index
    %0 = vector.load %arg1[%c0, %c0_0] : memref<16x16xf32, #tpu.memory_space<vmem>>, vector<16x16xf32>
    %c0_1 = arith.constant 0 : index
    %c0_2 = arith.constant 0 : index
    %1 = vector.load %arg2[%c0_1, %c0_2] : memref<16x128xf32, #tpu.memory_space<vmem>>, vector<16x128xf32>
    %cst = arith.constant dense<0.000000e+00> : vector<16x128xf32>
    %2 = tpu.matmul %0, %1, %cst {dimension_numbers = #tpu.dot_dimension_numbers<[1], [0], [0], [1], [0, 0, 1, 1], [], []>} : vector<16x16xf32>, vector<16x128xf32>, vector<16x128xf32> -> vector<16x128xf32>
    %c0_3 = arith.constant 0 : index
    %c0_4 = arith.constant 0 : index
    %3 = vector.load %arg3[%c0_3, %c0_4] : memref<1x128xf32, #tpu.memory_space<vmem>>, vector<1x128xf32>
    %4 = vector.broadcast %3 : vector<1x128xf32> to vector<16x128xf32>
    %5 = arith.addf %2, %4 : vector<16x128xf32>
    %6 = arith.negf %5 : vector<16x128xf32>
    %7 = math.exp %6 : vector<16x128xf32>
    %cst_5 = arith.constant 1.000000e+00 : f32
    %8 = vector.broadcast %cst_5 : f32 to vector<16x128xf32>
    %9 = arith.addf %8, %7 : vector<16x128xf32>
    %10 = arith.divf %8, %9 : vector<16x128xf32>
    %11 = arith.mulf %5, %10 : vector<16x128xf32>
    %c0_6 = arith.constant 0 : index
    %c0_7 = arith.constant 0 : index
    %12 = vector.load %arg4[%c0_6, %c0_7] : memref<128x8xf32, #tpu.memory_space<vmem>>, vector<128x8xf32>
    %13 = arith.mulf %11, %11 : vector<16x128xf32>
    %cst_8 = arith.constant dense<0.000000e+00> : vector<16x8xf32>
    %14 = tpu.matmul %13, %12, %cst_8 {dimension_numbers = #tpu.dot_dimension_numbers<[1], [0], [0], [1], [0, 0, 1, 1], [], []>} : vector<16x128xf32>, vector<128x8xf32>, vector<16x8xf32> -> vector<16x8xf32>
    %cst_9 = arith.constant 6.250000e-02 : f32
    %15 = vector.broadcast %cst_9 : f32 to vector<16x8xf32>
    %16 = arith.mulf %14, %15 : vector<16x8xf32>
    %17 = math.sqrt %16 : vector<16x8xf32>
    %cst_10 = arith.constant 1.000000e-07 : f32
    %18 = vector.broadcast %cst_10 : f32 to vector<16x8xf32>
    %19 = arith.addf %17, %18 : vector<16x8xf32>
    %20 = tpu.reciprocal %19 {approx = true} : vector<16x8xf32> -> vector<16x8xf32>
    %c0_11 = arith.constant 0 : index
    %c0_12 = arith.constant 0 : index
    %21 = vector.load %arg5[%c0_11, %c0_12] : memref<8x128xf32, #tpu.memory_space<vmem>>, vector<8x128xf32>
    %cst_13 = arith.constant dense<0.000000e+00> : vector<16x128xf32>
    %22 = tpu.matmul %20, %21, %cst_13 {dimension_numbers = #tpu.dot_dimension_numbers<[1], [0], [0], [1], [0, 0, 1, 1], [], []>} : vector<16x8xf32>, vector<8x128xf32>, vector<16x128xf32> -> vector<16x128xf32>
    %23 = arith.mulf %11, %22 : vector<16x128xf32>
    %c0_14 = arith.constant 0 : index
    %c0_15 = arith.constant 0 : index
    %24 = vector.load %arg6[%c0_14, %c0_15] : memref<128x128xf32, #tpu.memory_space<vmem>>, vector<128x128xf32>
    %c0_16 = arith.constant 0 : index
    %c0_17 = arith.constant 0 : index
    %25 = vector.load %arg7[%c0_16, %c0_17] : memref<1x128xf32, #tpu.memory_space<vmem>>, vector<1x128xf32>
    %cst_18 = arith.constant dense<0.000000e+00> : vector<16x128xf32>
    %26 = tpu.matmul %23, %24, %cst_18 {dimension_numbers = #tpu.dot_dimension_numbers<[1], [0], [0], [1], [0, 0, 1, 1], [], []>} : vector<16x128xf32>, vector<128x128xf32>, vector<16x128xf32> -> vector<16x128xf32>
    %27 = vector.broadcast %25 : vector<1x128xf32> to vector<16x128xf32>
    %28 = arith.addf %26, %27 : vector<16x128xf32>
    %29 = arith.negf %28 : vector<16x128xf32>
    %30 = math.exp %29 : vector<16x128xf32>
    %cst_19 = arith.constant 1.000000e+00 : f32
    %31 = vector.broadcast %cst_19 : f32 to vector<16x128xf32>
    %32 = arith.addf %31, %30 : vector<16x128xf32>
    %33 = arith.divf %31, %32 : vector<16x128xf32>
    %34 = arith.mulf %28, %33 : vector<16x128xf32>
    %c0_20 = arith.constant 0 : index
    %c0_21 = arith.constant 0 : index
    %35 = vector.load %arg8[%c0_20, %c0_21] : memref<128x128xf32, #tpu.memory_space<vmem>>, vector<128x128xf32>
    %c0_22 = arith.constant 0 : index
    %c0_23 = arith.constant 0 : index
    %36 = vector.load %arg9[%c0_22, %c0_23] : memref<1x128xf32, #tpu.memory_space<vmem>>, vector<1x128xf32>
    %cst_24 = arith.constant dense<0.000000e+00> : vector<16x128xf32>
    %37 = tpu.matmul %34, %35, %cst_24 {dimension_numbers = #tpu.dot_dimension_numbers<[1], [0], [0], [1], [0, 0, 1, 1], [], []>} : vector<16x128xf32>, vector<128x128xf32>, vector<16x128xf32> -> vector<16x128xf32>
    %38 = vector.broadcast %36 : vector<1x128xf32> to vector<16x128xf32>
    %39 = arith.addf %37, %38 : vector<16x128xf32>
    %c0_25 = arith.constant 0 : index
    %c0_26 = arith.constant 0 : index
    %40 = vector.load %arg10[%c0_25, %c0_26] : memref<16x128xf32, #tpu.memory_space<vmem>>, vector<16x128xf32>
    tpu.vector_store %arg10[%c0_25, %c0_26], %39 {strides = array<i32>} : memref<16x128xf32, #tpu.memory_space<vmem>>, vector<16x128xf32>,
    return
  }
  func.func @transform_0(%arg0: i32) -> (i32, i32) {
    %c0_i32 = arith.constant 0 : i32
    %c0_i32_0 = arith.constant 0 : i32
    return %arg0, %c0_i32 : i32, i32
  }
  func.func @transform_1(%arg0: i32) -> (i32, i32) {
    %c0_i32 = arith.constant 0 : i32
    %c0_i32_0 = arith.constant 0 : i32
    %c0_i32_1 = arith.constant 0 : i32
    return %c0_i32, %c0_i32_0 : i32, i32
  }
  func.func @transform_2(%arg0: i32) -> (i32, i32) {
    %c0_i32 = arith.constant 0 : i32
    %c0_i32_0 = arith.constant 0 : i32
    %c0_i32_1 = arith.constant 0 : i32
    return %c0_i32, %c0_i32_0 : i32, i32
  }
  func.func @transform_3(%arg0: i32) -> (i32, i32) {
    %c0_i32 = arith.constant 0 : i32
    %c0_i32_0 = arith.constant 0 : i32
    %c0_i32_1 = arith.constant 0 : i32
    return %c0_i32, %c0_i32_0 : i32, i32
  }
  func.func @transform_4(%arg0: i32) -> (i32, i32) {
    %c0_i32 = arith.constant 0 : i32
    %c0_i32_0 = arith.constant 0 : i32
    %c0_i32_1 = arith.constant 0 : i32
    return %c0_i32, %c0_i32_0 : i32, i32
  }
  func.func @transform_5(%arg0: i32) -> (i32, i32) {
    %c0_i32 = arith.constant 0 : i32
    %c0_i32_0 = arith.constant 0 : i32
    %c0_i32_1 = arith.constant 0 : i32
    return %c0_i32, %c0_i32_0 : i32, i32
  }
  func.func @transform_6(%arg0: i32) -> (i32, i32) {
    %c0_i32 = arith.constant 0 : i32
    %c0_i32_0 = arith.constant 0 : i32
    %c0_i32_1 = arith.constant 0 : i32
    return %c0_i32, %c0_i32_0 : i32, i32
  }
  func.func @transform_7(%arg0: i32) -> (i32, i32) {
    %c0_i32 = arith.constant 0 : i32
    %c0_i32_0 = arith.constant 0 : i32
    %c0_i32_1 = arith.constant 0 : i32
    return %c0_i32, %c0_i32_0 : i32, i32
  }
  func.func @transform_8(%arg0: i32) -> (i32, i32) {
    %c0_i32 = arith.constant 0 : i32
    %c0_i32_0 = arith.constant 0 : i32
    %c0_i32_1 = arith.constant 0 : i32
    return %c0_i32, %c0_i32_0 : i32, i32
  }
  func.func @transform_9(%arg0: i32) -> (i32, i32) {
    %c0_i32 = arith.constant 0 : i32
    %c0_i32_0 = arith.constant 0 : i32
    return %arg0, %c0_i32 : i32, i32
  }
}

</mosaic_0001>

<bundles_post_ra>
// kernel: tpu_custom_call.1
= control target key start
LH: loop header
LB: loop body
LE: loop exit
PB: predicated region body
PF: predicated region fallthrough
CT: control target
= control target key end

     0   :  { %14 = vsyncpa [#allocation3], 0  ;;  %s1627_s0 = inlined_call_operand.vmem [shape: f32[48,16], index: 0, kind: input, shape index: {}]   ;;  %s1628_s1 = inlined_call_operand.vmem [shape: f32[16,128], index: 1, kind: input, shape index: {}]   ;;  %s1629_s2 = inlined_call_operand.vmem [shape: f32[1,128], index: 2, kind: input, shape index: {}]   ;;  %s1630_s3 = inlined_call_operand.vmem [shape: f32[128,8], index: 3, kind: input, shape index: {}]   ;;  %s1631_s4 = inlined_call_operand.vmem [shape: f32[8,128], index: 4, kind: input, shape index: {}]   ;;  %s1632_s5 = inlined_call_operand.vmem [shape: f32[128,128], index: 5, kind: input, shape index: {}]   ;;  %s1633_s6 = inlined_call_operand.vmem [shape: f32[1,128], index: 6, kind: input, shape index: {}]   ;;  %s1634_s7 = inlined_call_operand.hbm [shape: f32[128,128], index: 7, kind: input, shape index: {}]   ;;  %s1635_s8 = inlined_call_operand.vmem [shape: f32[1,128], index: 8, kind: input, shape index: {}]   ;;  %s1636_s9 = inlined_call_operand.hbm [shape: f32[48,128], index: 9, kind: output, shape index: {}]  }
   0x1   :  { %15 = vsyncpa [#allocation4], 0 }
   0x2   :  { %17 = vsyncpa [#allocation4 + $0x1], 0  ;;  %s1384_s30 = smov 0   ;;  %s1386_s10 = smov 0  }
   0x3   :  { %s1388_s11 = smov 0   ;;  %s1390_s12 = smov 0  }
   0x4 LB: > { %s1405_s13 = sadd.s32 4294967295, %s1326_s12   ;;  %s954_s14 = sadd.s32 4294967294, %s1326_s12   ;;  %s1326_s12 = sphi %s1390_s12, %s1644_s12   ;;  %s1322_s11 = sphi %s1388_s11, %s1643_s11   ;;  %s1318_s10 = sphi %s1386_s10, %s1642_s10   ;;  %s1314_s30 = sphi %s1384_s30, %s1641_s30  }
   0x5   : > { %s1409_s15 = sadd.s32 1, %s1326_s12   ;;  %s224_s16 = sadd.s32 1, %s1322_s11 }
   0x6   : > { %s221_s17 = ssub.s32 %s1326_s12, %s1409_s15  ;;  %p234_p0 = scmp.ne.s32.totalorder %s1322_s11, %s1318_s10 }
   0x7   : > { %p222_p1 = scmp.eq.s32.totalorder %s221_s17, 0  ;;  %p235_p2 = scmp.eq.s32.totalorder %s1405_s13, 2 }
   0x8   : > { %p240_p3 = scmp.ne.s32.totalorder %s1318_s10, %s1314_s30  ;;  %p241_p4 = scmp.eq.s32.totalorder %s954_s14, 2 }
   0x9   : > { %s1420_s18 = scalar_select %p222_p1, %s1322_s11, %s224_s16  }
   0xa   : > { %p1422_p5 = por %p235_p2, %p234_p0  ;;  %p1426_p6 = por %p241_p4, %p240_p3 }
   0xb   : > { %p955_p7 = scmp.ge.s32.totalorder %s1326_s12, 1  ;;  %p248_p8 = scmp.lt.s32.totalorder %s1326_s12, 4 }
   0xc   : > { %s1638_s20 = scalar_select %p1426_p6, 1, 0 }
   0xd   : > { %p1172_p9 = scmp.eq.s32.totalorder %s1405_s13, 0  ;;  %p1433_p10 = pnand %p955_p7, %p248_p8 }
   0xe   : > { %s1328_s22 = smov [#allocation2]  }
   0xf   : > { %s278_s23 = sshll.u32 %s1328_s22, 4  ;;  %p1164_p11 = pneg %p1433_p10  ;;  %s279_s23 = int_to_ptr.vmem [resolvable:$true] %s278_s23 }
  0x10   : > { %s1247_s24 = scalar_lea.vmem %s279_s23, 2048  ;;  %p1255_p3 = scmp.lt.s32.totalorder %s279_s23, %s279_s23 }
  0x11   : > { %p1165_p12 = pnand %p1172_p9, %p1164_p11  ;;  %p1248_p0 = scmp.ne.s32.totalorder %s279_s23, %s1247_s24 }
  0x12   : > { %p1256_p4 = scmp.lt.s32.totalorder %s1247_s24, %s1247_s24 }
  0x13   : > { %p1238_p13 = pneg %p1165_p12 }
  0x14   : > { %p1257_p6 = por %p1256_p4, %p1255_p3 }
  0x15   : > { %p1250_p1 = pnand %p1248_p0, %p1238_p13 }
  0x17   : > { %p1251_p2 = pneg %p1250_p1 }
  0x19   : > { %p1258_p7 = pnand %p1257_p6, %p1251_p2 }
  0x1b   : > { %1261 = shalt.err (!%p1258_p7)
}
  0x1c   : > { %s1329_s25 = smov 128   ;;  %s1330_s26 = smov 8  }
  0x1d   : > { %1167 = dma.hbm_to_vmem [thread:$0]  (!%p1165_p12), %s1634_s7, 2048, %s279_s23, [#allocation3], %s1329_s25, %s1329_s25, %s1330_s26  }
  0x1e   : > { %306 = sbr.rel (%p1433_p10) target bundleno = 1151 (0x47f), region = 56 }
  0x23   : > { %1305 = dma.done.wait (%p1172_p9), [#allocation3], 2048  }
  0x24   : > { %1307 = vsyncadd (%p1172_p9), [#allocation3], 4294965248  ;;  %s961_s29 = sshll.u32 %s1405_s13, 1  ;;  %vm360_vm0 = vcmask 130048   ;;  %v352_v0 = vld [vmem:[%s1628_s1 + $0x8] sm:$0xff]  ;;  %v351_v1 = vld [vmem:[%s1628_s1] sm:$0xff] }
  0x25   : > { %p343_p8 = scmp.lt.s32.totalorder %s961_s29, 5  ;;  %1041 = vmatprep.subr.mxu0 %v352_v0  ;;  %v471_v4 = vld [vmem:[%s1630_s3 + $0x78] sm:$0xff]  ;;  %v470_v5 = vld [vmem:[%s1630_s3 + $0x70] sm:$0xff]  ;;  %v469_v6 = vld [vmem:[%s1630_s3 + $0x68] sm:$0xff]  ;;  %vm570_vm5 = vcmask 64512   ;;  %s339_s21 = sand.u32 1, %s1318_s10  }
  0x26   : > { %1042 = vmatpush3.msra.mxu0 %v352_v0  ;;  %1048 = vmatprep.subr.mxu1 %v471_v4  ;;  %v468_v7 = vld [vmem:[%s1630_s3 + $0x60] sm:$0xff]  ;;  %v467_v8 = vld [vmem:[%s1630_s3 + $0x58] sm:$0xff]  ;;  %v466_v9 = vld [vmem:[%s1630_s3 + $0x50] sm:$0xff]  ;;  %s960_s25 = sshll.u32 %s339_s21, 4  ;;  %s1587_s23 = scalar_lea.sflag [#allocation4], %s339_s21 }
  0x27   : > { %s1646_s29 = smov (!%p343_p8, %s961_s29), 5  ;;  %1043 = vmatprep.subr.mxu0 %v351_v1  ;;  %1049 = vmatpush3.msra.mxu1 %v471_v4  ;;  %v465_v10 = vld [vmem:[%s1630_s3 + $0x48] sm:$0xff]  ;;  %v464_v11 = vld [vmem:[%s1630_s3 + $0x40] sm:$0xff]  ;;  %v463_v12 = vld [vmem:[%s1630_s3 + $0x38] sm:$0xff]  ;;  %s341_s28 = scalar_lea.vmem [#allocation5], %s960_s25 }
  0x28   : > { %s962_s14 = sshll.u32 %s1646_s29, 3  ;;  %1044 = vmatpush3.msra.mxu0 %v351_v1  ;;  %1050 = vmatprep.subr.mxu1 %v470_v5  ;;  %v462_v13 = vld [vmem:[%s1630_s3 + $0x30] sm:$0xff]  ;;  %v461_v14 = vld [vmem:[%s1630_s3 + $0x28] sm:$0xff]  ;;  %v460_v15 = vld [vmem:[%s1630_s3 + $0x20] sm:$0xff]  ;;  %s880_s29 = sshll.u32 %s341_s28, 4  ;;  %s1580_s29 = int_to_ptr.vmem [resolvable:$true] %s880_s29 }
  0x29   : > { %s346_s22 = scalar_lea.vmem %s1627_s0, %s962_s14  ;;  %1051 = vmatpush3.msra.mxu1 %v470_v5  ;;  %v459_v16 = vld [vmem:[%s1630_s3 + $0x18] sm:$0xff]  ;;  %v458_v17 = vld [vmem:[%s1630_s3 + $0x10] sm:$0xff]  ;;  %v457_v18 = vld [vmem:[%s1630_s3 + $0x8] sm:$0xff]  ;;  %s979_s14 = sshll.u32 %s1405_s13, 8 }
  0x2a   : > { %v349_v2 = vld [vmem:[%s346_s22] sm:$0xff]  ;;  %v350_v3 = vld [vmem:[%s346_s22 + $0x8] sm:$0xff]  ;;  %1052 = vmatprep.subr.mxu1 %v469_v6  ;;  %v669_v38 = vld [vmem:[%s1632_s5 + $0x78] sm:$0xff]  ;;  %s1585_s22 = scalar_lea.hbm %s1636_s9, %s979_s14  ;;  %s1262_s24 = scalar_lea.vmem %s1580_s29, 256 }
  0x2b   : > { %1045 = vmatprep.mubr.msk.f32.mxu0 %vm360_vm0, %v349_v2  ;;  %1053 = vmatpush3.msra.mxu1 %v469_v6  ;;  %v456_v19 = vld [vmem:[%s1630_s3] sm:$0xff]  ;;  %v668_v57 = vld [vmem:[%s1632_s5 + $0x70] sm:$0xff]  ;;  %v667_v58 = vld [vmem:[%s1632_s5 + $0x68] sm:$0xff]  ;;  %p1263_p6 = scmp.ne.s32.totalorder %s1580_s29, %s1262_s24  ;;  %s1331_s13 = smov [#allocation5]  }
  0x2c   : > { %1046 = vmatmul.mubr.msk.f32.vlgmr.msra.gmra.mxu0 %vm360_vm0, %v350_v3  ;;  %1054 = vmatprep.subr.mxu1 %v468_v7  ;;  %v963_v20 = vld [vmem:[%s1629_s2] ss:$0 sm:$0xff]  ;;  %v665_v60 = vld [vmem:[%s1632_s5 + $0x58] sm:$0xff]  ;;  %v664_v61 = vld [vmem:[%s1632_s5 + $0x50] sm:$0xff]  ;;  %s1266_s25 = sshll.u32 %s1331_s13, 4  ;;  %s1267_s25 = int_to_ptr.vmem [resolvable:$false] %s1266_s25 }
  0x2d   : > { %1055 = vmatpush3.msra.mxu1 %v468_v7  ;;  %v569_v37 = vld [vmem:[%s1631_s4] sm:$0xff]  ;;  %v663_v62 = vld [vmem:[%s1632_s5 + $0x48] sm:$0xff]  ;;  %v661_v0 = vld [vmem:[%s1632_s5 + $0x38] sm:$0xff]  ;;  %p1264_p9 = pnand %p1263_p6, %p1422_p5  ;;  %s1268_s26 = scalar_lea.vmem %s1267_s25, 512 }
  0x2e   : > { %1056 = vmatprep.subr.mxu1 %v467_v8  ;;  %1083 = vmatprep.subr.mxu0 %v569_v37  ;;  %v666_v59 = vld [vmem:[%s1632_s5 + $0x60] sm:$0xff]  ;;  %v660_v1 = vld [vmem:[%s1632_s5 + $0x30] sm:$0xff]  ;;  %v659_v2 = vld [vmem:[%s1632_s5 + $0x28] sm:$0xff]  ;;  %p1269_p11 = scmp.lt.s32.totalorder %s1580_s29, %s1267_s25  ;;  %p1270_p12 = scmp.lt.s32.totalorder %s1268_s26, %s1262_s24 }
  0x2f   : > { %1057 = vmatpush3.msra.mxu1 %v467_v8  ;;  %1084 = vmatpush3.msra.mxu0 %v569_v37  ;;  %v662_v63 = vld [vmem:[%s1632_s5 + $0x40] sm:$0xff]  ;;  %v657_v4 = vld [vmem:[%s1632_s5 + $0x18] sm:$0xff]  ;;  %v656_v5 = vld [vmem:[%s1632_s5 + $0x10] sm:$0xff]  ;;  %p1265_p10 = pneg %p1264_p9 }
  0x30   : > { %1058 = vmatprep.subr.mxu1 %v466_v9  ;;  %1088 = vmatprep.subr.mxu0 %v669_v38  ;;  %v658_v3 = vld [vmem:[%s1632_s5 + $0x20] sm:$0xff]  ;;  %v655_v6 = vld [vmem:[%s1632_s5 + $0x8] sm:$0xff]  ;;  %p1271_p13 = por %p1270_p12, %p1269_p11 }
  0x31   : > { %1059 = vmatpush3.msra.mxu1 %v466_v9  ;;  %v654_v7 = vld [vmem:[%s1632_s5] sm:$0xff] }
  0x32   : > { %1060 = vmatprep.subr.mxu1 %v465_v10  ;;  %p1272_p0 = pnand %p1271_p13, %p1265_p10 }
  0x33   : > { %1061 = vmatpush3.msra.mxu1 %v465_v10 }
  0x34   : > { %1062 = vmatprep.subr.mxu1 %v464_v11 }
  0x35   : > { %1063 = vmatpush3.msra.mxu1 %v464_v11 }
  0x36   : > { %1064 = vmatprep.subr.mxu1 %v463_v12 }
  0x37   : > { %1065 = vmatpush3.msra.mxu1 %v463_v12  ;;  %v781_v12 = vld [vmem:[#allocation2 + $0x78] sm:$0xff] }
  0x38   : > { %1066 = vmatprep.subr.mxu1 %v462_v13 }
  0x39   : > { %1067 = vmatpush3.msra.mxu1 %v462_v13  ;;  %v780_v13 = vld [vmem:[#allocation2 + $0x70] sm:$0xff] }
  0x3a   : > { %1068 = vmatprep.subr.mxu1 %v461_v14 }
  0x3b   : > { %1069 = vmatpush3.msra.mxu1 %v461_v14  ;;  %v779_v14 = vld [vmem:[#allocation2 + $0x68] sm:$0xff] }
  0x3c   : > { %1070 = vmatprep.subr.mxu1 %v460_v15 }
  0x3d   : > { %1071 = vmatpush3.msra.mxu1 %v460_v15  ;;  %v778_v15 = vld [vmem:[#allocation2 + $0x60] sm:$0xff] }
  0x3e   : > { %1072 = vmatprep.subr.mxu1 %v459_v16 }
  0x3f   : > { %1073 = vmatpush3.msra.mxu1 %v459_v16  ;;  %v777_v16 = vld [vmem:[#allocation2 + $0x58] sm:$0xff] }
  0x40   : > { %1074 = vmatprep.subr.mxu1 %v458_v17 }
  0x41   : > { %1075 = vmatpush3.msra.mxu1 %v458_v17  ;;  %v776_v17 = vld [vmem:[#allocation2 + $0x50] sm:$0xff] }
  0x42   : > { %1076 = vmatprep.subr.mxu1 %v457_v18 }
  0x43   : > { %1077 = vmatpush3.msra.mxu1 %v457_v18  ;;  %v775_v18 = vld [vmem:[#allocation2 + $0x48] sm:$0xff] }
  0x44   : > { %1078 = vmatprep.subr.mxu1 %v456_v19 }
  0x45   : > { %1079 = vmatpush3.msra.mxu1 %v456_v19  ;;  %v774_v19 = vld [vmem:[#allocation2 + $0x40] sm:$0xff] }
  0x46   : > { %1123 = vmatprep.subr.mxu1 %v781_v12 }
  0xec   : > { %v1047_v21 = vpop.f32.mrf.mxu0 }
  0xed   : > { %v439_v22 = vadd.f32 %v1047_v21, %v963_v20  ;;  %v772_v21 = vld [vmem:[#allocation2 + $0x30] sm:$0xff] }
  0xee   : > { %v433_v23 = vpop.f32.mrf.mxu0 }
  0xef   : > { %v967_v24 = vmul.f32 -1.442695, %v439_v22  ;;  %v434_v25 = vadd.f32 %v963_v20, %v433_v23  ;;  %v773_v20 = vld [vmem:[#allocation2 + $0x38] sm:$0xff]  ;;  %v770_v23 = vld [vmem:[#allocation2 + $0x20] sm:$0xff] }
  0xf1   : > { %1212 = vpow2.f32 %v967_v24  ;;  %v966_v26 = vmul.f32 -1.442695, %v434_v25  ;;  %v769_v24 = vld [vmem:[#allocation2 + $0x18] sm:$0xff] }
  0xf3   : > { %1214 = vpow2.f32 %v966_v26  ;;  %v767_v26 = vld [vmem:[#allocation2 + $0x8] sm:$0xff] }
  0xfe   : > { %v1213_v27 = vpop.eup %1212 }
  0xff   : > { %v449_v28 = vadd.f32 1.0, %v1213_v27  ;;  %v766_v27 = vld [vmem:[#allocation2] sm:$0xff] }
 0x100   : > { %v1215_v29 = vpop.eup %1214 }
 0x101   : > { %1216 = vrcp.f32 %v449_v28  ;;  %v448_v30 = vadd.f32 1.0, %v1215_v29  ;;  %v970_v28 = vld [vmem:[%s1633_s6] ss:$0 sm:$0xff] }
 0x103   : > { %1218 = vrcp.f32 %v448_v30 }
 0x10e   : > { %v1217_v31 = vpop.eup %1216 }
 0x10f   : > { %v1511_v33 = vmul.f32 %v1217_v31, %v439_v22  ;;  %v771_v22 = vld [vmem:[#allocation2 + $0x28] sm:$0xff] }
 0x110   : > { %v1219_v32 = vpop.eup %1218 }
 0x111   : > { %v1513_v34 = vmul.f32 %v1219_v32, %v434_v25  ;;  %v473_v36 = vmul.f32 %v1511_v33, %v1511_v33  ;;  %v768_v25 = vld [vmem:[#allocation2 + $0x10] sm:$0xff] }
 0x113   : > { %v472_v35 = vmul.f32 %v1513_v34, %v1513_v34 }
 0x115   : > { %1080 = vmatprep.mubr.f32.mxu1 %v472_v35 }
 0x116   : > { %1081 = vmatmul.mubr.f32.vlgmr.msra.gmra.mxu1 %v473_v36 }
 0x117   : > { %1124 = vmatpush3.msra.mxu1 %v781_v12 }
 0x118   : > { %1125 = vmatprep.subr.mxu1 %v780_v13 }
 0x119   : > { %1126 = vmatpush3.msra.mxu1 %v780_v13 }
 0x11a   : > { %1127 = vmatprep.subr.mxu1 %v779_v14 }
 0x11b   : > { %1128 = vmatpush3.msra.mxu1 %v779_v14 }
 0x11c   : > { %1129 = vmatprep.subr.mxu1 %v778_v15 }
 0x11d   : > { %1130 = vmatpush3.msra.mxu1 %v778_v15 }
 0x11e   : > { %1131 = vmatprep.subr.mxu1 %v777_v16 }
 0x11f   : > { %1132 = vmatpush3.msra.mxu1 %v777_v16 }
 0x120   : > { %1133 = vmatprep.subr.mxu1 %v776_v17 }
 0x121   : > { %1134 = vmatpush3.msra.mxu1 %v776_v17 }
 0x122   : > { %1135 = vmatprep.subr.mxu1 %v775_v18 }
 0x123   : > { %1136 = vmatpush3.msra.mxu1 %v775_v18 }
 0x124   : > { %1137 = vmatprep.subr.mxu1 %v774_v19 }
 0x125   : > { %1138 = vmatpush3.msra.mxu1 %v774_v19 }
 0x126   : > { %1139 = vmatprep.subr.mxu1 %v773_v20 }
 0x127   : > { %1140 = vmatpush3.msra.mxu1 %v773_v20 }
 0x128   : > { %1141 = vmatprep.subr.mxu1 %v772_v21 }
 0x129   : > { %1142 = vmatpush3.msra.mxu1 %v772_v21 }
 0x12a   : > { %1143 = vmatprep.subr.mxu1 %v771_v22 }
 0x12b   : > { %1144 = vmatpush3.msra.mxu1 %v771_v22 }
 0x12c   : > { %1145 = vmatprep.subr.mxu1 %v770_v23 }
 0x12d   : > { %1146 = vmatpush3.msra.mxu1 %v770_v23 }
 0x12e   : > { %1147 = vmatprep.subr.mxu1 %v769_v24 }
 0x12f   : > { %1148 = vmatpush3.msra.mxu1 %v769_v24 }
 0x130   : > { %1149 = vmatprep.subr.mxu1 %v768_v25 }
 0x131   : > { %1150 = vmatpush3.msra.mxu1 %v768_v25 }
 0x132   : > { %1151 = vmatprep.subr.mxu1 %v767_v26 }
 0x133   : > { %1152 = vmatpush3.msra.mxu1 %v767_v26 }
 0x134   : > { %1153 = vmatprep.subr.mxu1 %v766_v27 }
 0x135   : > { %1154 = vmatpush3.msra.mxu1 %v766_v27 }
 0x1d6   : > { %v1082_v39 = vpop.f32.mrf.mxu1 }
 0x1d7   : > { %v550_v40 = vmul.f32 0.0625, %v1082_v39 }
 0x1d8   : > { %v540_v41 = vpop.f32.mrf.mxu1 }
 0x1d9   : > { %1220 = vrsqrt.f32 %v550_v40  ;;  %v549_v42 = vmul.f32 0.0625, %v540_v41  ;;  %vm560_vm1 = vcmp.eq.f32.partialorder %v550_v40, inf  ;;  %v563_v45 = vand.u32 2147483648, %v550_v40 }
 0x1da   : > { %vm562_vm2 = vcmp.eq.f32.partialorder %v550_v40, 0.0 }
 0x1db   : > { %1222 = vrsqrt.f32 %v549_v42  ;;  %vm553_vm3 = vcmp.eq.f32.partialorder %v549_v42, inf  ;;  %v556_v50 = vand.u32 2147483648, %v549_v42  ;;  %vm555_vm4 = vcmp.eq.f32.partialorder %v549_v42, 0.0 }
 0x1e6   : > { %v1221_v43 = vpop.eup %1220 }
 0x1e7   : > { %v559_v44 = vmul.f32 %v1221_v43, %v550_v40  ;;  %v973_v43 = vld [vmem:[%s1635_s8] ss:$0 sm:$0xff] }
 0x1e8   : > { %v1223_v46 = vpop.eup %1222 }
 0x1e9   : > { %v561_v47 = vsel %vm560_vm1, %v550_v40, %v559_v44  ;;  %v552_v49 = vmul.f32 %v1223_v46, %v549_v42 }
 0x1ea   : > { %v564_v48 = vsel %vm562_vm2, %v563_v45, %v561_v47 }
 0x1eb   : > { %v554_v51 = vsel %vm553_vm3, %v549_v42, %v552_v49  ;;  %v566_v52 = vadd.f32 1e-07, %v564_v48 }
 0x1ec   : > { %v557_v53 = vsel %vm555_vm4, %v556_v50, %v554_v51 }
 0x1ed   : > { %v565_v54 = vadd.f32 1e-07, %v557_v53 }
 0x1ef   : > { %1224 = vrcp.f32 %v565_v54 }
 0x1f0   : > { %1226 = vrcp.f32 %v566_v52 }
 0x1fc   : > { %v1225_v55 = vpop.eup %1224 }
 0x1fd   : > { %v1227_v56 = vpop.eup %1226  ;;  %1085 = vmatprep.mubr.msk.f32.mxu0 %vm570_vm5, %v1225_v55 }
 0x1fe   : > { %1086 = vmatmul.mubr.msk.f32.vlgmr.msra.gmra.mxu0 %vm570_vm5, %v1227_v56 }
 0x1ff   : > { %1089 = vmatpush3.msra.mxu0 %v669_v38 }
 0x200   : > { %1090 = vmatprep.subr.mxu0 %v668_v57 }
 0x201   : > { %1091 = vmatpush3.msra.mxu0 %v668_v57 }
 0x202   : > { %1092 = vmatprep.subr.mxu0 %v667_v58 }
 0x203   : > { %1093 = vmatpush3.msra.mxu0 %v667_v58 }
 0x204   : > { %1094 = vmatprep.subr.mxu0 %v666_v59 }
 0x205   : > { %1095 = vmatpush3.msra.mxu0 %v666_v59 }
 0x206   : > { %1096 = vmatprep.subr.mxu0 %v665_v60 }
 0x207   : > { %1097 = vmatpush3.msra.mxu0 %v665_v60 }
 0x208   : > { %1098 = vmatprep.subr.mxu0 %v664_v61 }
 0x209   : > { %1099 = vmatpush3.msra.mxu0 %v664_v61 }
 0x20a   : > { %1100 = vmatprep.subr.mxu0 %v663_v62 }
 0x20b   : > { %1101 = vmatpush3.msra.mxu0 %v663_v62 }
 0x20c   : > { %1102 = vmatprep.subr.mxu0 %v662_v63 }
 0x20d   : > { %1103 = vmatpush3.msra.mxu0 %v662_v63 }
 0x20e   : > { %1104 = vmatprep.subr.mxu0 %v661_v0 }
 0x20f   : > { %1105 = vmatpush3.msra.mxu0 %v661_v0 }
 0x210   : > { %1106 = vmatprep.subr.mxu0 %v660_v1 }
 0x211   : > { %1107 = vmatpush3.msra.mxu0 %v660_v1 }
 0x212   : > { %1108 = vmatprep.subr.mxu0 %v659_v2 }
 0x213   : > { %1109 = vmatpush3.msra.mxu0 %v659_v2 }
 0x214   : > { %1110 = vmatprep.subr.mxu0 %v658_v3 }
 0x215   : > { %1111 = vmatpush3.msra.mxu0 %v658_v3 }
 0x216   : > { %1112 = vmatprep.subr.mxu0 %v657_v4 }
 0x217   : > { %1113 = vmatpush3.msra.mxu0 %v657_v4 }
 0x218   : > { %1114 = vmatprep.subr.mxu0 %v656_v5 }
 0x219   : > { %1115 = vmatpush3.msra.mxu0 %v656_v5 }
 0x21a   : > { %1116 = vmatprep.subr.mxu0 %v655_v6 }
 0x21b   : > { %1117 = vmatpush3.msra.mxu0 %v655_v6 }
 0x21c   : > { %1118 = vmatprep.subr.mxu0 %v654_v7 }
 0x21d   : > { %1119 = vmatpush3.msra.mxu0 %v654_v7 }
 0x2be   : > { %v1087_v8 = vpop.f32.mrf.mxu0 }
 0x2bf   : > { %v653_v11 = vmul.f32 %v1087_v8, %v1511_v33 }
 0x2c0   : > { %v643_v9 = vpop.f32.mrf.mxu0 }
 0x2c1   : > { %v652_v10 = vmul.f32 %v643_v9, %v1513_v34 }
 0x2c3   : > { %1120 = vmatprep.mubr.f32.mxu0 %v652_v10 }
 0x2c4   : > { %1121 = vmatmul.mubr.f32.vlgmr.msra.gmra.mxu0 %v653_v11 }
 0x384   : > { %v1122_v29 = vpop.f32.mrf.mxu0 }
 0x385   : > { %v749_v30 = vadd.f32 %v1122_v29, %v970_v28 }
 0x386   : > { %v743_v31 = vpop.f32.mrf.mxu0 }
 0x387   : > { %v972_v32 = vmul.f32 -1.442695, %v749_v30  ;;  %v744_v33 = vadd.f32 %v970_v28, %v743_v31 }
 0x389   : > { %1228 = vpow2.f32 %v972_v32  ;;  %v971_v34 = vmul.f32 -1.442695, %v744_v33 }
 0x38b   : > { %1230 = vpow2.f32 %v971_v34 }
 0x396   : > { %v1229_v35 = vpop.eup %1228 }
 0x397   : > { %v759_v36 = vadd.f32 1.0, %v1229_v35 }
 0x398   : > { %v1231_v37 = vpop.eup %1230 }
 0x399   : > { %v758_v38 = vadd.f32 1.0, %v1231_v37  ;;  %1232 = vrcp.f32 %v759_v36 }
 0x39b   : > { %1234 = vrcp.f32 %v758_v38 }
 0x3a6   : > { %v1233_v39 = vpop.eup %1232 }
 0x3a7   : > { %v765_v42 = vmul.f32 %v1233_v39, %v749_v30 }
 0x3a8   : > { %v1235_v40 = vpop.eup %1234 }
 0x3a9   : > { %v764_v41 = vmul.f32 %v1235_v40, %v744_v33 }
 0x3ab   : > { %1155 = vmatprep.mubr.f32.mxu1 %v764_v41 }
 0x3ac   : > { %1156 = vmatmul.mubr.f32.vlgmr.msra.gmra.mxu1 %v765_v42 }
 0x46c   : > { %v1157_v44 = vpop.f32.mrf.mxu1 }
 0x46d   : > { %v861_v45 = vadd.f32 %v1157_v44, %v973_v43 }
 0x46e   : > { %v855_v46 = vpop.f32.mrf.mxu1 }
 0x46f   : > { %865 = vst [vmem:[%s341_s28 + $0x8] sm:$0xff] %v861_v45  ;;  %v856_v47 = vadd.f32 %v973_v43, %v855_v46 }
 0x471   : > { %864 = vst [vmem:[%s341_s28] sm:$0xff] %v856_v47 }
 0x472   : > { %1275 = shalt.err (!%p1272_p0)
}
 0x473   : > { %s1276_s21 = scalar_lea.hbm %s1585_s22, 256  ;;  %s1280_s14 = scalar_lea.hbm %s1636_s9, 768 }
 0x474   : > { %p1277_p1 = scmp.ne.s32.totalorder %s1585_s22, %s1276_s21  ;;  %p1281_p4 = scmp.lt.s32.totalorder %s1585_s22, %s1636_s9 }
 0x475   : > { %p1282_p7 = scmp.lt.s32.totalorder %s1280_s14, %s1276_s21 }
 0x476   : > { %p1278_p2 = pnand %p1277_p1, %p1422_p5 }
 0x477   : > { %p1283_p8 = por %p1282_p7, %p1281_p4 }
 0x478   : > { %p1279_p3 = pneg %p1278_p2 }
 0x47a   : > { %p1284_p6 = pnand %p1283_p8, %p1279_p3 }
 0x47c   : > { %1287 = shalt.err (!%p1284_p6)
}
 0x47d   : > { %s1332_s24 = smov 128   ;;  %s1333_s13 = smov 8  }
 0x47e   : > { %1162 = dma.vmem_to_hbm [thread:$0]  (%p1422_p5), %s1580_s29, 256, %s1585_s22, %s1587_s23, %s1332_s24, %s1332_s24, %s1333_s13  }
 0x47f PF: > { %p1174_p9 = scmp.ge.s32.totalorder %s1326_s12, 2  ;;  %s895_s25 = sand.u32 1, %s1314_s30  }
 0x480   : > { %p1640_p10 = scmp.ne.s32.totalorder %s1638_s20, 0  ;;  %s896_s26 = scalar_lea.sflag [#allocation4], %s895_s25 }
 0x482   : > { %p1169_p11 = pnand %p1174_p9, %p1640_p10 }
 0x484   : > { %p1170_p12 = pneg %p1169_p11 }
 0x486   : > { %1309 = dma.done.wait (%p1170_p12), %s896_s26, 256  }
 0x487   : > { %1311 = vsyncadd (%p1170_p12), %s896_s26, 4294967040  ;;  %p20_p13 = scmp.ge.s32.totalorder %s1409_s15, 5   ;;  %s1641_s30 = smov %s1318_s10 }
 0x488   : > { %s1642_s10 = smov %s1322_s11  ;;  %s1643_s11 = smov %s1420_s18 }
 0x489   : > { %s1644_s12 = smov %s1409_s15  ;;  %22 = sbr.rel (!%p20_p13) target bundleno = 4 (0x4), region = 96 }
 0x48e   :  { %901 = vsyncpa [#allocation3], 1 }
 0x48f   :  { %903 = vsyncpa [#allocation3 + $0x1], 1 }
 0x490   :  { %904 = vsyncpa [#allocation4], 1 }
 0x491   :  { %906 = vsyncpa [#allocation4 + $0x1], 1 }

</bundles_post_ra>
